<compile_context>
chip_gen: v6e
topology: v6e:2x2x1
jax: 0.10.0
libtpu: 0.0.40
codegen_flags: <defaults>
</compile_context>

<pallas_src>
import jax
import jax.numpy as jnp
from jax.experimental import pallas as pl
from jax.experimental.pallas import tpu as pltpu

INPUT_SIZE = 32 * 32   # 1024
HIDDEN_SIZE = 100
NUM_CLASSES = 10

HIDDEN_PAD = 128       # 100 -> 128 (lane-dense MXU shapes)
CLASS_PAD = 128        # 10  -> 128 (lane-dense output store)


def _round_up(x, m):
    return (x + m - 1) // m * m


def mlp_kernel(x_ref, w1_ref, b1_ref, w2_ref, b2_ref, o_ref):
    # x: (TILE_B, 1024) bf16   w1: (1024, 128) bf16   b1: (1, 128) f32
    # w2: (128, 128) bf16      b2: (1, 128) f32       o: (TILE_B, 128) bf16
    x = x_ref[...]

    # Linear(1024 -> 128) + tanh   (bf16 MXU inputs, f32 accumulation)
    h = jnp.dot(x, w1_ref[...], preferred_element_type=jnp.float32) + b1_ref[...]
    h = jnp.tanh(h)

    # Linear(128 -> 128).  Padded output columns of w2 are zero, and the
    # padded lanes of b2 are pre-set to -1e30, so padded logits underflow to
    # exactly 0 in the softmax -- no in-kernel masking needed.
    logits = (jnp.dot(h.astype(w2_ref.dtype), w2_ref[...],
                      preferred_element_type=jnp.float32) + b2_ref[...])

    # Numerically stable softmax over the class axis (exact normalization).
    m = jnp.max(logits, axis=-1, keepdims=True)
    e = jnp.exp(logits - m)
    denom = jnp.sum(e, axis=-1, keepdims=True)
    o_ref[...] = (e / denom).astype(o_ref.dtype)


def net_forward(x, w1, b1, w2, b2, *, tile_b=1024):
    """x: (B, 1024); preferably already bf16 (cast here is a no-op then).
    Weights pre-padded: w1 (1024,128) bf16, b1 (1,128) f32,
    w2 (128,128) bf16, b2 (1,128) f32 (padded class lanes = -1e30)."""
    B = x.shape[0]

    # Adaptive tile: never pad a small batch up to a huge tile.  For large B,
    # at most tile_b-1 rows of padding (one partial tile), never whole grids.
    # Note for v7x: for very large B prefer tile_b such that the grid has >=2
    # steps so both TensorCores get work.
    tile_b = min(tile_b, _round_up(max(B, 1), 8))
    b_pad = _round_up(max(B, 1), tile_b)

    x = x.astype(jnp.bfloat16)            # no-op if supplied in bf16 upstream
    if b_pad != B:
        x = jnp.pad(x, ((0, b_pad - B), (0, 0)))   # padded rows -> zeros

    grid = (b_pad // tile_b,)
    cost = pl.CostEstimate(
        flops=2 * b_pad * (INPUT_SIZE * HIDDEN_PAD + HIDDEN_PAD * CLASS_PAD),
        transcendentals=b_pad * (HIDDEN_PAD + CLASS_PAD),
        bytes_accessed=(b_pad * INPUT_SIZE * 2          # x (bf16)
                        + INPUT_SIZE * HIDDEN_PAD * 2   # w1 (bf16)
                        + HIDDEN_PAD * CLASS_PAD * 2    # w2 (bf16)
                        + (HIDDEN_PAD + CLASS_PAD) * 4  # biases (f32)
                        + b_pad * CLASS_PAD * 2),       # output (bf16)
    )

    out = pl.pallas_call(
        mlp_kernel,
        out_shape=jax.ShapeDtypeStruct((b_pad, CLASS_PAD), jnp.bfloat16),
        grid=grid,
        in_specs=[
            pl.BlockSpec((tile_b, INPUT_SIZE), lambda i: (i, 0)),       # x tile
            pl.BlockSpec((INPUT_SIZE, HIDDEN_PAD), lambda i: (0, 0)),   # w1 (resident)
            pl.BlockSpec((1, HIDDEN_PAD), lambda i: (0, 0)),            # b1 (resident)
            pl.BlockSpec((HIDDEN_PAD, CLASS_PAD), lambda i: (0, 0)),    # w2 (resident)
            pl.BlockSpec((1, CLASS_PAD), lambda i: (0, 0)),             # b2 (resident)
        ],
        out_specs=pl.BlockSpec((tile_b, CLASS_PAD), lambda i: (i, 0)),
        compiler_params=pltpu.CompilerParams(
            dimension_semantics=("parallel",)),
        cost_estimate=cost,
    )(x, w1, b1, w2, b2)

    return out[:B, :NUM_CLASSES].astype(jnp.float32)


def init_params(key):
    """nn.Linear-style U(-1/sqrt(fan_in), 1/sqrt(fan_in)) init, stored
    transposed (in, out) and zero-padded to lane-dense shapes.  Padded class
    lanes of b2 are set to -1e30 so they vanish in the in-kernel softmax."""
    k1, k2, k3, k4 = jax.random.split(key, 4)
    lim1 = 1.0 / jnp.sqrt(jnp.float32(INPUT_SIZE))
    lim2 = 1.0 / jnp.sqrt(jnp.float32(HIDDEN_SIZE))

    w1 = jax.random.uniform(k1, (INPUT_SIZE, HIDDEN_SIZE), jnp.float32, -lim1, lim1)
    b1 = jax.random.uniform(k2, (1, HIDDEN_SIZE), jnp.float32, -lim1, lim1)
    w2 = jax.random.uniform(k3, (HIDDEN_SIZE, NUM_CLASSES), jnp.float32, -lim2, lim2)
    b2 = jax.random.uniform(k4, (1, NUM_CLASSES), jnp.float32, -lim2, lim2)

    # Zero-pad hidden axes; padded hidden lanes stay exactly 0 through tanh.
    w1_p = jnp.zeros((INPUT_SIZE, HIDDEN_PAD), jnp.float32).at[:, :HIDDEN_SIZE].set(w1)
    b1_p = jnp.zeros((1, HIDDEN_PAD), jnp.float32).at[:, :HIDDEN_SIZE].set(b1)
    w2_p = jnp.zeros((HIDDEN_PAD, CLASS_PAD), jnp.float32).at[:HIDDEN_SIZE, :NUM_CLASSES].set(w2)
    # Padded class lanes get -1e30 (w2 padded columns are 0, so logit = bias).
    b2_p = jnp.full((1, CLASS_PAD), -1e30, jnp.float32).at[:, :NUM_CLASSES].set(b2)

    return w1_p.astype(jnp.bfloat16), b1_p, w2_p.astype(jnp.bfloat16), b2_p


def net_reference(x, w1, b1, w2, b2):
    """Plain-JAX reference mirroring the kernel's precision choices
    (bf16 MXU inputs, f32 accumulation)."""
    h = jnp.tanh(jnp.dot(x.astype(jnp.bfloat16), w1,
                         preferred_element_type=jnp.float32) + b1)
    logits = jnp.dot(h.astype(jnp.bfloat16), w2,
                     preferred_element_type=jnp.float32) + b2
    logits = logits[:, :NUM_CLASSES]
    return jax.nn.softmax(logits, axis=-1)


if __name__ == "__main__":
    key = jax.random.PRNGKey(0)
    kx, kp = jax.random.split(key)

    B = 8  # small demo batch
    x = jax.random.normal(kx, (B, INPUT_SIZE), jnp.float32).astype(jnp.bfloat16)
    w1, b1, w2, b2 = init_params(kp)

    out = net_forward(x, w1, b1, w2, b2, tile_b=1024)
    out = jax.block_until_ready(out)

    ref = net_reference(x, w1, b1, w2, b2)

    assert out.shape == (B, NUM_CLASSES)
    assert bool(jnp.all(jnp.isfinite(out)))
    # bf16 output store => ~2^-8 relative error on the probabilities.
    assert jnp.allclose(out, ref, atol=1e-2, rtol=1e-2)
    assert jnp.allclose(jnp.sum(out, axis=-1), 1.0, atol=1e-2)

    print("KERNEL_OK")
</pallas_src>

<mosaic_0001>
module attributes {stable_mosaic.version = 11 : i64} {
  func.func @mlp_kernel(%arg0: i32, %arg1: memref<8x1024xbf16, #tpu.memory_space<vmem>>, %arg2: memref<1024x128xbf16, #tpu.memory_space<vmem>>, %arg3: memref<1x128xf32, #tpu.memory_space<vmem>>, %arg4: memref<128x128xbf16, #tpu.memory_space<vmem>>, %arg5: memref<1x128xf32, #tpu.memory_space<vmem>>, %arg6: memref<8x128xbf16, #tpu.memory_space<vmem>>) attributes {dimension_semantics = [#tpu.dimension_semantics<parallel>], iteration_bounds = array<i64: 1>, scalar_prefetch = 0 : i64, scratch_operands = 0 : i64, tpu.core_type = #tpu.core_type<tc>, window_params = [{transform_indices = @transform_0, window_bounds = array<i64: 8, 1024>}, {pipeline_mode = #tpu.pipeline_mode<synchronous>, transform_indices = @transform_1, window_bounds = array<i64: 1024, 128>}, {pipeline_mode = #tpu.pipeline_mode<synchronous>, transform_indices = @transform_2, window_bounds = array<i64: 1, 128>}, {pipeline_mode = #tpu.pipeline_mode<synchronous>, transform_indices = @transform_3, window_bounds = array<i64: 128, 128>}, {pipeline_mode = #tpu.pipeline_mode<synchronous>, transform_indices = @transform_4, window_bounds = array<i64: 1, 128>}, {transform_indices = @transform_5, window_bounds = array<i64: 8, 128>}]} {
    %c0 = arith.constant 0 : index
    %c0_0 = arith.constant 0 : index
    %0 = vector.load %arg1[%c0, %c0_0] : memref<8x1024xbf16, #tpu.memory_space<vmem>>, vector<8x1024xbf16>
    %c0_1 = arith.constant 0 : index
    %c0_2 = arith.constant 0 : index
    %1 = vector.load %arg2[%c0_1, %c0_2] : memref<1024x128xbf16, #tpu.memory_space<vmem>>, vector<1024x128xbf16>
    %cst = arith.constant dense<0.000000e+00> : vector<8x128xf32>
    %2 = tpu.matmul %0, %1, %cst {dimension_numbers = #tpu.dot_dimension_numbers<[1], [0], [0], [1], [0, 0, 1, 1], [], []>} : vector<8x1024xbf16>, vector<1024x128xbf16>, vector<8x128xf32> -> vector<8x128xf32>
    %c0_3 = arith.constant 0 : index
    %c0_4 = arith.constant 0 : index
    %3 = vector.load %arg3[%c0_3, %c0_4] : memref<1x128xf32, #tpu.memory_space<vmem>>, vector<1x128xf32>
    %4 = vector.broadcast %3 : vector<1x128xf32> to vector<8x128xf32>
    %5 = arith.addf %2, %4 : vector<8x128xf32>
    %6 = math.tanh %5 : vector<8x128xf32>
    %7 = arith.truncf %6 : vector<8x128xf32> to vector<8x128xbf16>
    %c0_5 = arith.constant 0 : index
    %c0_6 = arith.constant 0 : index
    %8 = vector.load %arg4[%c0_5, %c0_6] : memref<128x128xbf16, #tpu.memory_space<vmem>>, vector<128x128xbf16>
    %cst_7 = arith.constant dense<0.000000e+00> : vector<8x128xf32>
    %9 = tpu.matmul %7, %8, %cst_7 {dimension_numbers = #tpu.dot_dimension_numbers<[1], [0], [0], [1], [0, 0, 1, 1], [], []>} : vector<8x128xbf16>, vector<128x128xbf16>, vector<8x128xf32> -> vector<8x128xf32>
    %c0_8 = arith.constant 0 : index
    %c0_9 = arith.constant 0 : index
    %10 = vector.load %arg5[%c0_8, %c0_9] : memref<1x128xf32, #tpu.memory_space<vmem>>, vector<1x128xf32>
    %11 = vector.broadcast %10 : vector<1x128xf32> to vector<8x128xf32>
    %12 = arith.addf %9, %11 : vector<8x128xf32>
    %cst_10 = arith.constant dense<0xFF800000> : vector<8xf32>
    %13 = vector.multi_reduction <maximumf>, %12, %cst_10 [1] : vector<8x128xf32> to vector<8xf32>
    %14 = vector.shape_cast %13 : vector<8xf32> to vector<8x1xf32>
    %15 = vector.broadcast %14 : vector<8x1xf32> to vector<8x128xf32>
    %16 = arith.subf %12, %15 : vector<8x128xf32>
    %17 = math.exp %16 : vector<8x128xf32>
    %cst_11 = arith.constant dense<0.000000e+00> : vector<8xf32>
    %18 = vector.multi_reduction <add>, %17, %cst_11 [1] : vector<8x128xf32> to vector<8xf32>
    %19 = vector.shape_cast %18 : vector<8xf32> to vector<8x1xf32>
    %20 = vector.broadcast %19 : vector<8x1xf32> to vector<8x128xf32>
    %21 = arith.divf %17, %20 : vector<8x128xf32>
    %22 = arith.truncf %21 : vector<8x128xf32> to vector<8x128xbf16>
    %c0_12 = arith.constant 0 : index
    %c0_13 = arith.constant 0 : index
    %23 = vector.load %arg6[%c0_12, %c0_13] : memref<8x128xbf16, #tpu.memory_space<vmem>>, vector<8x128xbf16>
    tpu.vector_store %arg6[%c0_12, %c0_13], %22 {strides = array<i32>} : memref<8x128xbf16, #tpu.memory_space<vmem>>, vector<8x128xbf16>,
    return
  }
  func.func @transform_0(%arg0: i32) -> (i32, i32) {
    %c0_i32 = arith.constant 0 : i32
    %c0_i32_0 = arith.constant 0 : i32
    return %arg0, %c0_i32 : i32, i32
  }
  func.func @transform_1(%arg0: i32) -> (i32, i32) {
    %c0_i32 = arith.constant 0 : i32
    %c0_i32_0 = arith.constant 0 : i32
    %c0_i32_1 = arith.constant 0 : i32
    return %c0_i32, %c0_i32_0 : i32, i32
  }
  func.func @transform_2(%arg0: i32) -> (i32, i32) {
    %c0_i32 = arith.constant 0 : i32
    %c0_i32_0 = arith.constant 0 : i32
    %c0_i32_1 = arith.constant 0 : i32
    return %c0_i32, %c0_i32_0 : i32, i32
  }
  func.func @transform_3(%arg0: i32) -> (i32, i32) {
    %c0_i32 = arith.constant 0 : i32
    %c0_i32_0 = arith.constant 0 : i32
    %c0_i32_1 = arith.constant 0 : i32
    return %c0_i32, %c0_i32_0 : i32, i32
  }
  func.func @transform_4(%arg0: i32) -> (i32, i32) {
    %c0_i32 = arith.constant 0 : i32
    %c0_i32_0 = arith.constant 0 : i32
    %c0_i32_1 = arith.constant 0 : i32
    return %c0_i32, %c0_i32_0 : i32, i32
  }
  func.func @transform_5(%arg0: i32) -> (i32, i32) {
    %c0_i32 = arith.constant 0 : i32
    %c0_i32_0 = arith.constant 0 : i32
    return %arg0, %c0_i32 : i32, i32
  }
}

</mosaic_0001>

<bundles_post_ra>
// kernel: tpu_custom_call.1
= control target key start
LH: loop header
LB: loop body
LE: loop exit
PB: predicated region body
PF: predicated region fallthrough
CT: control target
= control target key end

     0   :  { %10 = vsyncpa [#allocation3], 0  ;;  %s1347_s0 = inlined_call_operand.hbm [shape: bf16[8,1024], index: 0, kind: input, shape index: {}]   ;;  %s1348_s1 = inlined_call_operand.hbm [shape: bf16[1024,128], index: 1, kind: input, shape index: {}]   ;;  %s1349_s2 = inlined_call_operand.vmem [shape: f32[1,128], index: 2, kind: input, shape index: {}]   ;;  %s1350_s3 = inlined_call_operand.hbm [shape: bf16[128,128], index: 3, kind: input, shape index: {}]   ;;  %s1351_s4 = inlined_call_operand.vmem [shape: f32[1,128], index: 4, kind: input, shape index: {}]   ;;  %s1352_s5 = inlined_call_operand.hbm [shape: bf16[8,128], index: 5, kind: output, shape index: {}]  }
   0x1   :  { %11 = vsyncpa [#allocation6], 0 }
   0x2   :  { %12 = vsyncpa [#allocation4], 0  ;;  %s1291_s18 = smov [#allocation5]  }
   0x3   :  { %s28_s19 = sshll.u32 %s1291_s18, 4  ;;  %s29_s19 = int_to_ptr.vmem [resolvable:$true] %s28_s19 }
   0x4   :  { %s1213_s20 = scalar_lea.vmem %s29_s19, 8192  ;;  %p1218_p1 = scmp.lt.s32.totalorder %s29_s19, %s29_s19 }
   0x5   :  { %p1214_p0 = scmp.ne.s32.totalorder %s29_s19, %s1213_s20  ;;  %p1219_p2 = scmp.lt.s32.totalorder %s1213_s20, %s1213_s20 }
   0x7   :  { %p1220_p3 = por %p1219_p2, %p1218_p1 }
   0x9   :  { %p1221_p4 = pnand %p1220_p3, %p1214_p0 }
   0xb   :  { %1224 = shalt.err (!%p1221_p4)
}
   0xc   :  { %s1292_s21 = smov 64   ;;  %s1293_s22 = smov 4  }
   0xd   :  { %34 = dma.hbm_to_vmem [thread:$0]  %s1348_s1, 8192, %s29_s19, [#allocation6], %s1292_s21, %s1292_s21, %s1293_s22  }
   0xe   :  { %s1294_s25 = smov [#allocation2]   ;;  %s1295_s27 = smov [#allocation7]  }
   0xf   :  { %s19_s26 = sshll.u32 %s1294_s25, 4  ;;  %s42_s28 = sshll.u32 %s1295_s27, 4  ;;  %s20_s26 = int_to_ptr.vmem [resolvable:$true] %s19_s26  ;;  %s43_s28 = int_to_ptr.vmem [resolvable:$true] %s42_s28 }
  0x10   :  { %s1233_s29 = scalar_lea.vmem %s20_s26, 512  ;;  %p1238_p6 = scmp.lt.s32.totalorder %s20_s26, %s20_s26 }
  0x11   :  { %p1234_p5 = scmp.ne.s32.totalorder %s20_s26, %s1233_s29  ;;  %p1239_p7 = scmp.lt.s32.totalorder %s1233_s29, %s1233_s29 }
  0x13   :  { %p1240_p8 = por %p1239_p7, %p1238_p6 }
  0x15   :  { %p1241_p9 = pnand %p1240_p8, %p1234_p5 }
  0x17   :  { %1244 = shalt.err (!%p1241_p9)
}
  0x18   :  { %22 = dma.hbm_to_vmem [thread:$0]  %s1347_s0, 512, %s20_s26, [#allocation3]  }
  0x19   :  { %s1253_s7 = scalar_lea.vmem %s43_s28, 1024  ;;  %p1258_p11 = scmp.lt.s32.totalorder %s43_s28, %s43_s28 }
  0x1a   :  { %p1254_p10 = scmp.ne.s32.totalorder %s43_s28, %s1253_s7  ;;  %p1259_p12 = scmp.lt.s32.totalorder %s1253_s7, %s1253_s7 }
  0x1c   :  { %p1260_p13 = por %p1259_p12, %p1258_p11 }
  0x1e   :  { %p1261_p0 = pnand %p1260_p13, %p1254_p10 }
  0x20   :  { %1264 = shalt.err (!%p1261_p0)
}
  0x21   :  { %48 = dma.hbm_to_vmem [thread:$0]  %s1350_s3, 1024, %s43_s28, [#allocation6], %s1292_s21, %s1292_s21, %s1293_s22  }
  0x22   :  { %1285 = dma.done.wait [#allocation3], 512  }
  0x23   :  { %1286 = vsyncadd [#allocation3], 4294966784 }
  0x24   :  { %1287 = dma.done.wait [#allocation6], 9216  }
  0x25   :  { %1288 = vsyncadd [#allocation6], 4294958080  ;;  %v1119_v0 = vld [vmem:[#allocation5 + $0x78] sm:$0xff]   ;;  %v1123_v4 = vld [vmem:[#allocation5 + $0x70] sm:$0xff]   ;;  %vm1297_vm0 = vmmov 0   ;;  %s1298_s10 = smov [#allocation8]  }
  0x26   :  { %v1120_v1 = vld [vmem:[#allocation5 + $0xf8] sm:$0xff]   ;;  %994 = vmatprep.subr.bf16.mxu0 %v1119_v0  ;;  %v1124_v5 = vld [vmem:[#allocation5 + $0xf0] sm:$0xff]   ;;  %v1127_v8 = vld [vmem:[#allocation5 + $0x68] sm:$0xff]   ;;  %s902_s11 = sshll.u32 %s1298_s10, 4  ;;  %s903_s11 = int_to_ptr.vmem [resolvable:$true] %s902_s11 }
  0x27   :  { %v1121_v2 = vld [vmem:[#allocation5 + $0x38] sm:$0xff]   ;;  %1016 = vmatprep.subr.bf16.mxu1 %v1120_v1  ;;  %v1125_v6 = vld [vmem:[#allocation5 + $0x30] sm:$0xff]   ;;  %v1128_v9 = vld [vmem:[#allocation5 + $0xe8] sm:$0xff]   ;;  %p1270_p2 = scmp.lt.s32.totalorder %s903_s11, %s903_s11 }
  0x28   :  { %v1122_v3 = vld [vmem:[#allocation5 + $0xb8] sm:$0xff]   ;;  %995 = vmatpush3.bf16.msra.mxu0 %v1121_v2  ;;  %v1126_v7 = vld [vmem:[#allocation5 + $0xb0] sm:$0xff]   ;;  %v1129_v10 = vld [vmem:[#allocation5 + $0x28] sm:$0xff]  }
  0x29   :  { %1017 = vmatpush3.bf16.msra.mxu1 %v1122_v3  ;;  %996 = vmatprep.subr.bf16.mxu0 %v1123_v4  ;;  %v1130_v11 = vld [vmem:[#allocation5 + $0xa8] sm:$0xff]   ;;  %v1131_v12 = vld [vmem:[#allocation5 + $0x60] sm:$0xff]   ;;  %v1135_v16 = vld [vmem:[#allocation5 + $0x58] sm:$0xff]  }
  0x2a   :  { %1018 = vmatprep.subr.bf16.mxu1 %v1124_v5  ;;  %v1132_v13 = vld [vmem:[#allocation5 + $0xe0] sm:$0xff]   ;;  %v1136_v17 = vld [vmem:[#allocation5 + $0xd8] sm:$0xff]   ;;  %v1139_v20 = vld [vmem:[#allocation5 + $0x50] sm:$0xff]  }
  0x2b   :  { %v1133_v14 = vld [vmem:[#allocation5 + $0x20] sm:$0xff]   ;;  %v1137_v18 = vld [vmem:[#allocation5 + $0x18] sm:$0xff]   ;;  %v1140_v21 = vld [vmem:[#allocation5 + $0xd0] sm:$0xff]  }
  0x2c   :  { %997 = vmatpush3.bf16.msra.mxu0 %v1125_v6  ;;  %v1134_v15 = vld [vmem:[#allocation5 + $0xa0] sm:$0xff]   ;;  %v1138_v19 = vld [vmem:[#allocation5 + $0x98] sm:$0xff]   ;;  %v1141_v22 = vld [vmem:[#allocation5 + $0x10] sm:$0xff]  }
  0x2d   :  { %1019 = vmatpush3.bf16.msra.mxu1 %v1126_v7  ;;  %998 = vmatprep.subr.bf16.mxu0 %v1127_v8  ;;  %v1142_v23 = vld [vmem:[#allocation5 + $0x90] sm:$0xff]   ;;  %v1143_v24 = vld [vmem:[#allocation5 + $0x48] sm:$0xff]   ;;  %v1147_v28 = vld [vmem:[#allocation5 + $0x40] sm:$0xff]  }
  0x2e   :  { %1020 = vmatprep.subr.bf16.mxu1 %v1128_v9  ;;  %v1144_v25 = vld [vmem:[#allocation5 + $0xc8] sm:$0xff]   ;;  %v1148_v29 = vld [vmem:[#allocation5 + $0xc0] sm:$0xff]   ;;  %v1155_v38 = vld [vmem:[#allocation5 + $0x178] sm:$0xff]  }
  0x2f   :  { %v1145_v26 = vld [vmem:[#allocation5 + $0x8] sm:$0xff]   ;;  %v1149_v30 = vld [vmem:[#allocation5] sm:$0xff]   ;;  %v1156_v39 = vld [vmem:[#allocation5 + $0x1f8] sm:$0xff]  }
  0x30   :  { %999 = vmatpush3.bf16.msra.mxu0 %v1129_v10  ;;  %v1146_v27 = vld [vmem:[#allocation5 + $0x88] sm:$0xff]   ;;  %v1150_v31 = vld [vmem:[#allocation5 + $0x80] sm:$0xff]   ;;  %v1157_v40 = vld [vmem:[#allocation5 + $0x138] sm:$0xff]  }
  0x31   :  { %1021 = vmatpush3.bf16.msra.mxu1 %v1130_v11  ;;  %1000 = vmatprep.subr.bf16.mxu0 %v1131_v12  ;;  %v61_v32 = vld [vmem:[#allocation2] sm:$0xff]  ;;  %v62_v33 = vld [vmem:[#allocation2 + $0x8] sm:$0xff]  ;;  %v1158_v41 = vld [vmem:[#allocation5 + $0x1b8] sm:$0xff]  }
  0x32   :  { %1022 = vmatprep.subr.bf16.mxu1 %v1132_v13  ;;  %v913_v34 = vcombine.low %v61_v32, %v61_v32  ;;  %v914_v35 = vcombine.high %v61_v32, %v61_v32  ;;  %v915_v36 = vcombine.low %v62_v33, %v62_v33  ;;  %v916_v37 = vcombine.high %v62_v33, %v62_v33  ;;  %v1159_v42 = vld [vmem:[#allocation5 + $0x170] sm:$0xff]   ;;  %v1163_v46 = vld [vmem:[#allocation5 + $0x168] sm:$0xff]   ;;  %v1167_v50 = vld [vmem:[#allocation5 + $0x160] sm:$0xff]  }
  0x33   :  { %v1160_v43 = vld [vmem:[#allocation5 + $0x1f0] sm:$0xff]   ;;  %v1164_v47 = vld [vmem:[#allocation5 + $0x1e8] sm:$0xff]   ;;  %v1168_v51 = vld [vmem:[#allocation5 + $0x1e0] sm:$0xff]   ;;  %v1296_v13 = vmov 0.0  }
  0x34   :  { %1001 = vmatpush3.bf16.msra.mxu0 %v1133_v14  ;;  %644 = vmatprep.mubr.bf16.mxu0 %v914_v35  ;;  %v1161_v44 = vld [vmem:[#allocation5 + $0x130] sm:$0xff]   ;;  %v1165_v48 = vld [vmem:[#allocation5 + $0x128] sm:$0xff]   ;;  %v1169_v52 = vld [vmem:[#allocation5 + $0x120] sm:$0xff]  }
  0x35   :  { %1023 = vmatpush3.bf16.msra.mxu1 %v1134_v15  ;;  %1002 = vmatprep.subr.bf16.mxu0 %v1135_v16  ;;  %v1162_v45 = vld [vmem:[#allocation5 + $0x1b0] sm:$0xff]   ;;  %v1166_v49 = vld [vmem:[#allocation5 + $0x1a8] sm:$0xff]   ;;  %v1170_v53 = vld [vmem:[#allocation5 + $0x1a0] sm:$0xff]  }
  0x36   :  { %1024 = vmatprep.subr.bf16.mxu1 %v1136_v17  ;;  %684 = vmatprep.mubr.bf16.mxu1 %v916_v37  ;;  %v1171_v54 = vld [vmem:[#allocation5 + $0x158] sm:$0xff]   ;;  %v1175_v58 = vld [vmem:[#allocation5 + $0x150] sm:$0xff]   ;;  %v1179_v62 = vld [vmem:[#allocation5 + $0x148] sm:$0xff]  }
  0x37   :  { %v1172_v55 = vld [vmem:[#allocation5 + $0x1d8] sm:$0xff]   ;;  %v1176_v59 = vld [vmem:[#allocation5 + $0x1d0] sm:$0xff]   ;;  %v1180_v63 = vld [vmem:[#allocation5 + $0x1c8] sm:$0xff]  }
  0x38   :  { %1003 = vmatpush3.bf16.msra.mxu0 %v1137_v18  ;;  %v1173_v56 = vld [vmem:[#allocation5 + $0x118] sm:$0xff]   ;;  %v1177_v60 = vld [vmem:[#allocation5 + $0x110] sm:$0xff]   ;;  %v1181_v0 = vld [vmem:[#allocation5 + $0x108] sm:$0xff]  }
  0x39   :  { %1025 = vmatpush3.bf16.msra.mxu1 %v1138_v19  ;;  %1004 = vmatprep.subr.bf16.mxu0 %v1139_v20  ;;  %v1174_v57 = vld [vmem:[#allocation5 + $0x198] sm:$0xff]   ;;  %v1178_v61 = vld [vmem:[#allocation5 + $0x190] sm:$0xff]   ;;  %v1182_v1 = vld [vmem:[#allocation5 + $0x188] sm:$0xff]  }
  0x3a   :  { %1026 = vmatprep.subr.bf16.mxu1 %v1140_v21  ;;  %v1183_v2 = vld [vmem:[#allocation5 + $0x140] sm:$0xff]   ;;  %v63_v6 = vld [vmem:[#allocation2 + $0x10] sm:$0xff]  ;;  %v64_v9 = vld [vmem:[#allocation2 + $0x18] sm:$0xff] }
  0x3b   :  { %v1184_v3 = vld [vmem:[#allocation5 + $0x1c0] sm:$0xff]   ;;  %v917_v7 = vcombine.low %v63_v6, %v63_v6  ;;  %v918_v8 = vcombine.high %v63_v6, %v63_v6  ;;  %v919_v10 = vcombine.low %v64_v9, %v64_v9  ;;  %v920_v11 = vcombine.high %v64_v9, %v64_v9  ;;  %v1191_v12 = vld [vmem:[#allocation7 + $0x38] sm:$0xff]   ;;  %v1192_v14 = vld [vmem:[#allocation7 + $0x30] sm:$0xff]  }
  0x3c   :  { %1005 = vmatpush3.bf16.msra.mxu0 %v1141_v22  ;;  %v1185_v4 = vld [vmem:[#allocation5 + $0x100] sm:$0xff]   ;;  %v1193_v15 = vld [vmem:[#allocation7 + $0x28] sm:$0xff]   ;;  %v1195_v17 = vld [vmem:[#allocation7 + $0x18] sm:$0xff]  }
  0x3d   :  { %1027 = vmatpush3.bf16.msra.mxu1 %v1142_v23  ;;  %1006 = vmatprep.subr.bf16.mxu0 %v1143_v24  ;;  %v1186_v5 = vld [vmem:[#allocation5 + $0x180] sm:$0xff]   ;;  %v1196_v18 = vld [vmem:[#allocation7 + $0x10] sm:$0xff]   ;;  %v1197_v19 = vld [vmem:[#allocation7 + $0x8] sm:$0xff]  }
  0x3e   :  { %1028 = vmatprep.subr.bf16.mxu1 %v1144_v25  ;;  %v1194_v16 = vld [vmem:[#allocation7 + $0x20] sm:$0xff]  }
  0x3f   :  { %v1198_v20 = vld [vmem:[#allocation7] sm:$0xff]  }
  0x40   :  { %1007 = vmatpush3.bf16.msra.mxu0 %v1145_v26 }
  0x41   :  { %1029 = vmatpush3.bf16.msra.mxu1 %v1146_v27  ;;  %1008 = vmatprep.subr.bf16.mxu0 %v1147_v28 }
  0x42   :  { %1030 = vmatprep.subr.bf16.mxu1 %v1148_v29 }
  0x44   :  { %1009 = vmatpush3.bf16.msra.mxu0 %v1149_v30  ;;  %v912_v30 = vld [vmem:[%s1349_s2] ss:$0 sm:$0xff] }
  0x45   :  { %1031 = vmatpush3.bf16.msra.mxu1 %v1150_v31  ;;  %1038 = vmatprep.subr.bf16.mxu0 %v1155_v38 }
  0x46   :  { %1060 = vmatprep.subr.bf16.mxu1 %v1156_v39 }
  0x47   :  { %645 = vmatmul.mubr.bf16.vlgmr.msra.gmra.mxu0 %v913_v34 }
  0x48   :  { %685 = vmatmul.mubr.bf16.vlgmr.msra.gmra.mxu1 %v915_v36  ;;  %1039 = vmatpush3.bf16.msra.mxu0 %v1157_v40 }
  0x49   :  { %1061 = vmatpush3.bf16.msra.mxu1 %v1158_v41  ;;  %1040 = vmatprep.subr.bf16.mxu0 %v1159_v42 }
  0x4a   :  { %1062 = vmatprep.subr.bf16.mxu1 %v1160_v43  ;;  %724 = vmatprep.mubr.bf16.mxu0 %v918_v8 }
  0x4b   :  { %764 = vmatprep.mubr.bf16.mxu1 %v920_v11 }
  0x4c   :  { %1041 = vmatpush3.bf16.msra.mxu0 %v1161_v44 }
  0x4d   :  { %1063 = vmatpush3.bf16.msra.mxu1 %v1162_v45  ;;  %1042 = vmatprep.subr.bf16.mxu0 %v1163_v46 }
  0x4e   :  { %1064 = vmatprep.subr.bf16.mxu1 %v1164_v47 }
  0x50   :  { %1043 = vmatpush3.bf16.msra.mxu0 %v1165_v48  ;;  %v985_v48 = vld [vmem:[%s1351_s4] ss:$0 sm:$0xff]  ;;  %s1265_s4 = scalar_lea.vmem %s903_s11, 64 }
  0x51   :  { %1065 = vmatpush3.bf16.msra.mxu1 %v1166_v49  ;;  %1044 = vmatprep.subr.bf16.mxu0 %v1167_v50  ;;  %p1266_p1 = scmp.ne.s32.totalorder %s903_s11, %s1265_s4  ;;  %p1271_p3 = scmp.lt.s32.totalorder %s1265_s4, %s1265_s4 }
  0x52   :  { %1066 = vmatprep.subr.bf16.mxu1 %v1168_v51 }
  0x53   :  { %p1272_p4 = por %p1271_p3, %p1270_p2 }
  0x54   :  { %1045 = vmatpush3.bf16.msra.mxu0 %v1169_v52 }
  0x55   :  { %1067 = vmatpush3.bf16.msra.mxu1 %v1170_v53  ;;  %1046 = vmatprep.subr.bf16.mxu0 %v1171_v54  ;;  %p1273_p5 = pnand %p1272_p4, %p1266_p1 }
  0x56   :  { %1068 = vmatprep.subr.bf16.mxu1 %v1172_v55 }
  0x58   :  { %1047 = vmatpush3.bf16.msra.mxu0 %v1173_v56 }
  0x59   :  { %1069 = vmatpush3.bf16.msra.mxu1 %v1174_v57  ;;  %1048 = vmatprep.subr.bf16.mxu0 %v1175_v58 }
  0x5a   :  { %1070 = vmatprep.subr.bf16.mxu1 %v1176_v59 }
  0x5c   :  { %1049 = vmatpush3.bf16.msra.mxu0 %v1177_v60 }
  0x5d   :  { %1071 = vmatpush3.bf16.msra.mxu1 %v1178_v61  ;;  %1050 = vmatprep.subr.bf16.mxu0 %v1179_v62 }
  0x5e   :  { %1072 = vmatprep.subr.bf16.mxu1 %v1180_v63 }
  0x60   :  { %1051 = vmatpush3.bf16.msra.mxu0 %v1181_v0 }
  0x61   :  { %1073 = vmatpush3.bf16.msra.mxu1 %v1182_v1  ;;  %1052 = vmatprep.subr.bf16.mxu0 %v1183_v2 }
  0x62   :  { %1074 = vmatprep.subr.bf16.mxu1 %v1184_v3 }
  0x64   :  { %1053 = vmatpush3.bf16.msra.mxu0 %v1185_v4 }
  0x65   :  { %1075 = vmatpush3.bf16.msra.mxu1 %v1186_v5  ;;  %1091 = vmatprep.subr.bf16.mxu0 %v1296_v13 }
  0x67   :  { %725 = vmatmul.mubr.bf16.vlgmr.msra.gmra.mxu0 %v917_v7 }
  0x68   :  { %765 = vmatmul.mubr.bf16.vlgmr.msra.gmra.mxu1 %v919_v10  ;;  %1092 = vmatpush3.bf16.msra.mxu0 %v1191_v12 }
  0x69   :  { %1093 = vmatprep.subr.bf16.mxu0 %v1296_v13  ;;  %1107 = vmatprep.mubr.msk.bf16.mxu0 %vm1297_vm0, %v1296_v13 }
  0x6c   :  { %1094 = vmatpush3.bf16.msra.mxu0 %v1192_v14 }
  0x6d   :  { %1095 = vmatprep.subr.bf16.mxu0 %v1296_v13 }
  0x70   :  { %1096 = vmatpush3.bf16.msra.mxu0 %v1193_v15 }
  0x71   :  { %1097 = vmatprep.subr.bf16.mxu0 %v1296_v13 }
  0x74   :  { %1098 = vmatpush3.bf16.msra.mxu0 %v1194_v16 }
  0x75   :  { %1099 = vmatprep.subr.bf16.mxu0 %v1296_v13 }
  0x78   :  { %1100 = vmatpush3.bf16.msra.mxu0 %v1195_v17 }
  0x79   :  { %1101 = vmatprep.subr.bf16.mxu0 %v1296_v13 }
  0x7c   :  { %1102 = vmatpush3.bf16.msra.mxu0 %v1196_v18 }
  0x7d   :  { %1103 = vmatprep.subr.bf16.mxu0 %v1296_v13 }
  0x80   :  { %1104 = vmatpush3.bf16.msra.mxu0 %v1197_v19 }
  0x81   :  { %1105 = vmatprep.subr.bf16.mxu0 %v1296_v13 }
  0x84   :  { %1106 = vmatpush3.bf16.msra.mxu0 %v1198_v20 }
 0x107   :  { %v1010_v21 = vpop.f32.mrf.mxu0 }
 0x108   :  { %v1032_v22 = vpop.f32.mrf.mxu1 }
 0x109   :  { %v1011_v23 = vpop.f32.mrf.mxu0 }
 0x10a   :  { %v1033_v24 = vpop.f32.mrf.mxu1  ;;  %v1012_v29 = vadd.f32 %v1011_v23, %v1010_v21 }
 0x10b   :  { %v1013_v25 = vpop.f32.mrf.mxu0  ;;  %v1034_v32 = vadd.f32 %v1033_v24, %v1032_v22 }
 0x10c   :  { %v1035_v26 = vpop.f32.mrf.mxu1  ;;  %v647_v31 = vadd.f32 %v1012_v29, %v912_v30 }
 0x10d   :  { %v1014_v27 = vpop.f32.mrf.mxu0 }
 0x10e   :  { %v1036_v28 = vpop.f32.mrf.mxu1  ;;  %v687_v37 = vadd.f32 %v1034_v32, %v647_v31 }
 0x127   :  { %v1054_v33 = vpop.f32.mrf.mxu0 }
 0x128   :  { %v1076_v34 = vpop.f32.mrf.mxu1 }
 0x129   :  { %v1055_v35 = vpop.f32.mrf.mxu0 }
 0x12a   :  { %v1077_v36 = vpop.f32.mrf.mxu1  ;;  %v1056_v38 = vadd.f32 %v1055_v35, %v1054_v33 }
 0x12b   :  { %v1057_v39 = vpop.f32.mrf.mxu0  ;;  %v1078_v42 = vadd.f32 %v1077_v36, %v1076_v34 }
 0x12c   :  { %v1079_v40 = vpop.f32.mrf.mxu1  ;;  %v727_v41 = vadd.f32 %v1056_v38, %v687_v37 }
 0x12d   :  { %v1058_v43 = vpop.f32.mrf.mxu0 }
 0x12e   :  { %v1080_v44 = vpop.f32.mrf.mxu1  ;;  %v767_v45 = vadd.f32 %v1078_v42, %v727_v41 }
 0x130   :  { %1199 = vtanh.f32 %v767_v45 }
 0x13d   :  { %v1200_v46 = vpop.eup %1199 }
 0x13e   :  { %v773_v47 = vpack.c.bf16 %v1200_v46, %v1200_v46 }
 0x140   :  { %1108 = vmatmul.mubr.bf16.vlgmr.msra.gmra.mxu0 %v773_v47 }
 0x200   :  { %v879_v49 = vpop.f32.mrf.mxu0 }
 0x201   :  { %v880_v50 = vadd.f32 %v985_v48, %v879_v49 }
 0x202   :  { %v1109_v51 = vpop.f32.mrf.mxu0 }
 0x203   :  { %885 = vmax.xlane.f32.xlu0 %v880_v50 }
 0x204   :  { %v882_v52 = vpop.f32.mrf.mxu0 }
 0x206   :  { %v1110_v53 = vpop.f32.mrf.mxu0 }
 0x28c   :  { %v886_v54 = vpop.xlane.xlu0 %885 }
 0x28d   :  { %v887_v55 = vsub.f32 %v880_v50, %v886_v54 }
 0x28f   :  { %v888_v56 = vmul.f32 1.442695, %v887_v55 }
 0x291   :  { %1201 = vpow2.f32 %v888_v56 }
 0x29e   :  { %v1202_v57 = vpop.eup %1201 }
 0x29f   :  { %890 = vadd.xlane.f32.xlu0 %v1202_v57 }
 0x328   :  { %v891_v58 = vpop.xlane.xlu0 %890 }
 0x329   :  { %1203 = vrcp.f32 %v891_v58 }
 0x336   :  { %v1204_v59 = vpop.eup %1203 }
 0x337   :  { %v893_v60 = vmul.f32 %v1204_v59, %v1202_v57 }
 0x339   :  { %v894_v61 = vpack.c.bf16 %v893_v60, %v893_v60 }
 0x33b   :  { %895 = vst [vmem:[#allocation8] sm:$0xf] %v894_v61 }
 0x33c   :  { %1276 = shalt.err (!%p1273_p5)
}
 0x33d   :  { %905 = dma.vmem_to_hbm [thread:$0]  %s903_s11, 64, %s1352_s5, [#allocation4]  }
 0x33e   :  { %1289 = dma.done.wait [#allocation4], 64  }
 0x33f   :  { %1290 = vsyncadd [#allocation4], 4294967232 }
 0x340   :  { %909 = vsyncpa [#allocation3], 1 }
 0x341   :  { %910 = vsyncpa [#allocation6], 1 }
 0x342   :  { %911 = vsyncpa [#allocation4], 1 }

</bundles_post_ra>
